<compile_context>
chip_gen: v6e
topology: v6e:2x2x1
jax: 0.10.0
libtpu: 0.0.40
codegen_flags: <defaults>
</compile_context>

<pallas_src>
import functools

import jax
import jax.numpy as jnp
from jax.experimental import pallas as pl
from jax.experimental.pallas import tpu as pltpu


def _round_up(v, m):
    return (v + m - 1) // m * m


def _vmem_capacity_bytes():
    """Physical VMEM per core (generation-aware tiling); conservative fallback = v7x 64 MiB."""
    try:
        info = pltpu.get_tpu_info()
        cap = int(getattr(info, "vmem_capacity_bytes", 0) or 0)
        if cap > 0:
            return cap
    except Exception:
        pass
    return 64 * 1024 * 1024


_VMEM_CAP_BYTES = _vmem_capacity_bytes()


def _feature_transform_kernel(x_ref, w_msgs_ref, w_root_ref, msgs_ref, root_ref,
                              *, num_relations):
    """Hoisted per-node transforms, one grid step per node-row tile.

    x_ref      : [TM, Din]        node features for this tile
    w_msgs_ref : [R, Din, Dp]     per-relation weights (resident)
    w_root_ref : [Din, Dp]        root weight (resident)
    msgs_ref   : [R, TM, Dp]      X @ W_r, written directly in relation-stacked layout
    root_ref   : [TM, Dp]         X @ W_root
    """
    x = x_ref[...]
    for r in range(num_relations):
        msgs_ref[r] = jnp.dot(x, w_msgs_ref[r], preferred_element_type=jnp.float32)
    root_ref[...] = jnp.dot(x, w_root_ref[...], preferred_element_type=jnp.float32)


def _rgcn_contract_kernel(a_ref, xw_ref, root_ref, bias_ref, o_ref, acc_ref):
    """K-tiled relational contraction: out = A_cat @ XW_stack + XW_root + bias.

    a_ref    : [TM, TK]   mean-normalized adjacency row tile / K tile
    xw_ref   : [TK, Dp]   stacked per-relation messages, K tile
    root_ref : [TM, Dp]   root term rows for this tile (constant across k)
    bias_ref : [1, Dp]    bias (constant)
    o_ref    : [TM, Dp]   lane-dense output tile (resident across k)
    acc_ref  : [TM, Dp]   f32 VMEM accumulator scratch
    """
    k = pl.program_id(1)

    @pl.when(k == 0)
    def _():
        acc_ref[...] = root_ref[...] + bias_ref[...]

    acc_ref[...] += jnp.dot(a_ref[...], xw_ref[...], preferred_element_type=jnp.float32)

    @pl.when(k == pl.num_programs(1) - 1)
    def _():
        o_ref[...] = acc_ref[...].astype(o_ref.dtype)


@functools.partial(jax.jit, static_argnames=("num_relations",))
def rgcn_conv_pallas(x, edge_index, edge_type, weight, root, bias, num_relations=6):
    """x: [N, Din] f32, edge_index: [2, E] i32, edge_type: [E] i32,
    weight: [R, Din, Dout], root: [Din, Dout], bias: [Dout]."""
    N, Din = x.shape
    R, _, Dout = weight.shape
    f32 = jnp.float32

    # ---- generation-aware VMEM budget ----
    big_vmem = _VMEM_CAP_BYTES >= 96 * 1024 * 1024         # v5e/v6e: 128 MiB, v7x: 64 MiB
    vmem_limit = max(32 * 1024 * 1024,
                     min(int(_VMEM_CAP_BYTES * 0.72), 100 * 1024 * 1024))

    # ---- tiling (lane-dense output, sublane-aligned rows, VMEM-bounded K tiles) ----
    Dp = _round_up(Dout, 128)                              # lane-dense output columns
    tm_target = 512 if big_vmem else 256                   # bigger row tiles where VMEM allows
    while tm_target > 64 and 5 * tm_target * Dp * 4 > vmem_limit // 4:
        tm_target //= 2                                    # keep resident out/root/acc modest
    Np8 = _round_up(N, 8)
    TM = min(tm_target, Np8)
    Np = _round_up(Np8, TM)
    num_row_tiles = Np // TM

    # K-tile size from remaining VMEM budget (A block + XW block, double-buffered).
    fixed_bytes = 5 * TM * Dp * 4 + 2 * Dp * 4             # out(x2) + root(x2) + acc + bias
    budget = vmem_limit - fixed_bytes - 6 * 1024 * 1024    # compiler scratch + headroom
    per_tk = 2 * (TM + Dp) * 4
    tk_cap = min(16384, max(512, budget // per_tk))

    K_total = R * Np
    if K_total <= tk_cap:
        TK = K_total                                       # single K tile, full-dim block
        K_pad = K_total
    else:
        TK = 0
        cand = (tk_cap // 128) * 128
        while cand >= 128:                                 # prefer a TK that divides K exactly
            if K_total % cand == 0:
                TK = cand
                break
            cand -= 128
        if TK == 0:
            TK = max(128, (tk_cap // 128) * 128)
        K_pad = _round_up(K_total, TK)
    num_k_tiles = K_pad // TK

    # ---- glue: dense per-relation mean-normalized adjacency, built directly in [Np, R*Np] ----
    src = edge_index[0].astype(jnp.int32)
    dst = edge_index[1].astype(jnp.int32)
    rel = edge_type.astype(jnp.int32)
    adj = jnp.zeros((Np, R, Np), f32).at[dst, rel, src].add(1.0)
    deg = adj.sum(axis=-1, keepdims=True)
    adj = adj / jnp.maximum(deg, 1.0)                      # mean aggregation; isolated -> 0
    a_cat = adj.reshape(Np, K_total)
    if K_pad != K_total:
        a_cat = jnp.pad(a_cat, ((0, 0), (0, K_pad - K_total)))

    # ---- pad inputs / weights (zero-padded lanes; padded rows contribute zero) ----
    xp = jnp.zeros((Np, Din), f32).at[:N].set(x.astype(f32))
    w_msgs = jnp.zeros((R, Din, Dp), f32).at[:, :, :Dout].set(weight.astype(f32))
    w_root = jnp.zeros((Din, Dp), f32).at[:, :Dout].set(root.astype(f32))
    bias_pad = jnp.zeros((1, Dp), f32).at[0, :Dout].set(bias.astype(f32))

    # ---- Pallas kernel 1: per-node transforms, computed once (hoisted out of contraction) ----
    msgs, xw_root = pl.pallas_call(
        functools.partial(_feature_transform_kernel, num_relations=R),
        out_shape=(jax.ShapeDtypeStruct((R, Np, Dp), f32),
                   jax.ShapeDtypeStruct((Np, Dp), f32)),
        grid_spec=pltpu.PrefetchScalarGridSpec(
            num_scalar_prefetch=0,
            grid=(num_row_tiles,),
            in_specs=[
                pl.BlockSpec((TM, Din), lambda i: (i, 0)),        # X rows of this tile
                pl.BlockSpec((R, Din, Dp), lambda i: (0, 0, 0)),  # W_r (resident)
                pl.BlockSpec((Din, Dp), lambda i: (0, 0)),        # W_root (resident)
            ],
            out_specs=[
                pl.BlockSpec((R, TM, Dp), lambda i: (0, i, 0)),   # messages, stacked layout
                pl.BlockSpec((TM, Dp), lambda i: (i, 0)),         # root term
            ],
        ),
        compiler_params=pltpu.CompilerParams(
            dimension_semantics=("parallel",),
            vmem_limit_bytes=vmem_limit,
        ),
    )(xp, w_msgs, w_root)

    xw_stack = msgs.reshape(R * Np, Dp)                    # contiguous reshape, no transpose
    if K_pad != K_total:
        xw_stack = jnp.pad(xw_stack, ((0, K_pad - K_total), (0, 0)))

    # ---- Pallas kernel 2: K-tiled relational contraction (+ root + bias) ----
    out_pad = pl.pallas_call(
        _rgcn_contract_kernel,
        out_shape=jax.ShapeDtypeStruct((Np, Dp), x.dtype),
        grid_spec=pltpu.PrefetchScalarGridSpec(
            num_scalar_prefetch=0,
            grid=(num_row_tiles, num_k_tiles),
            in_specs=[
                pl.BlockSpec((TM, TK), lambda i, k: (i, k)),      # adjacency tile
                pl.BlockSpec((TK, Dp), lambda i, k: (k, 0)),      # stacked messages tile
                pl.BlockSpec((TM, Dp), lambda i, k: (i, 0)),      # root rows (const over k)
                pl.BlockSpec((1, Dp), lambda i, k: (0, 0)),       # bias
            ],
            out_specs=pl.BlockSpec((TM, Dp), lambda i, k: (i, 0)),
            scratch_shapes=[pltpu.VMEM((TM, Dp), jnp.float32)],
        ),
        compiler_params=pltpu.CompilerParams(
            dimension_semantics=("parallel", "arbitrary"),        # rows shard across v7x's 2 TCs
            vmem_limit_bytes=vmem_limit,
        ),
    )(a_cat, xw_stack, xw_root, bias_pad)

    return out_pad[:N, :Dout]


class GraphEncoderPallas:
    """Mirrors GraphEncoder: a single RGCNConv with num_relations=6."""

    NUM_RELATIONS = 6

    def __init__(self, input_dim, output_dim, key):
        k_w, k_r, k_b = jax.random.split(key, 3)
        scale = 1.0 / jnp.sqrt(jnp.float32(input_dim))
        self.weight = (jax.random.normal(
            k_w, (self.NUM_RELATIONS, input_dim, output_dim), jnp.float32) * scale)
        self.root = jax.random.normal(k_r, (input_dim, output_dim), jnp.float32) * scale
        self.bias = jax.random.normal(k_b, (output_dim,), jnp.float32) * 0.01

    def __call__(self, x, edge_index, edge_attr=None):
        if edge_attr is None:
            edge_type = jnp.zeros((edge_index.shape[1],), dtype=jnp.int32)
        else:
            edge_type = edge_attr.astype(jnp.int32)
        return rgcn_conv_pallas(x, edge_index, edge_type,
                                self.weight, self.root, self.bias,
                                num_relations=self.NUM_RELATIONS)


def _rgcn_reference(x, edge_index, edge_type, weight, root, bias):
    """Pure-JAX reference of RGCNConv (aggr='mean') for verification."""
    N, _ = x.shape
    R = weight.shape[0]
    src, dst = edge_index[0], edge_index[1]
    out = x @ root + bias[None, :]
    for r in range(R):
        adj = jnp.zeros((N, N), jnp.float32).at[dst, src].add(
            (edge_type == r).astype(jnp.float32))
        deg = adj.sum(-1, keepdims=True)
        adj = adj / jnp.maximum(deg, 1.0)
        out = out + adj @ (x @ weight[r])
    return out


if __name__ == "__main__":
    key = jax.random.PRNGKey(0)
    k_x, k_src, k_dst, k_rel, k_params = jax.random.split(key, 5)

    N, Din, Dout, E = 16, 32, 32, 48  # small graph: 16 nodes, 48 edges, 6 relations

    x = jax.random.normal(k_x, (N, Din), jnp.float32)
    edge_index = jnp.stack([
        jax.random.randint(k_src, (E,), 0, N, dtype=jnp.int32),
        jax.random.randint(k_dst, (E,), 0, N, dtype=jnp.int32),
    ], axis=0)
    edge_attr = jax.random.randint(k_rel, (E,), 0, 6, dtype=jnp.int32)

    model = GraphEncoderPallas(Din, Dout, k_params)

    out = model(x, edge_index, edge_attr)
    out = jax.block_until_ready(out)

    ref = _rgcn_reference(x, edge_index, edge_attr,
                          model.weight, model.root, model.bias)
    assert out.shape == (N, Dout)
    assert jnp.allclose(out, ref, atol=1e-4, rtol=1e-4)

    print("KERNEL_OK")
</pallas_src>

<mosaic_0001>
module attributes {stable_mosaic.version = 11 : i64} {
  func.func private @main(%arg0: i32) attributes {dimension_semantics = [#tpu.dimension_semantics<core_parallel>], iteration_bounds = array<i64: 2>, tpu.core_type = #tpu.core_type<sc_scalar_subcore>, window_params = []} {
    return
  }
}

module attributes {stable_mosaic.version = 11 : i64} {
  func.func private @main(%arg0: i32) attributes {dimension_semantics = [#tpu.dimension_semantics<core_parallel>], iteration_bounds = array<i64: 2>, tpu.core_type = #tpu.core_type<sc_scalar_subcore>, window_params = []} {
    return
  }
}

module attributes {stable_mosaic.version = 11 : i64} {
  func.func @_feature_transform_kernel(%arg0: i32, %arg1: memref<16x32xf32, #tpu.memory_space<vmem>>, %arg2: memref<6x32x128xf32, #tpu.memory_space<vmem>>, %arg3: memref<32x128xf32, #tpu.memory_space<vmem>>, %arg4: memref<6x16x128xf32, #tpu.memory_space<vmem>>, %arg5: memref<16x128xf32, #tpu.memory_space<vmem>>) attributes {dimension_semantics = [#tpu.dimension_semantics<parallel>], iteration_bounds = array<i64: 1>, scalar_prefetch = 0 : i64, scratch_operands = 0 : i64, tpu.core_type = #tpu.core_type<tc>, window_params = [{transform_indices = @transform_0, window_bounds = array<i64: 16, 32>}, {pipeline_mode = #tpu.pipeline_mode<synchronous>, transform_indices = @transform_1, window_bounds = array<i64: 6, 32, 128>}, {pipeline_mode = #tpu.pipeline_mode<synchronous>, transform_indices = @transform_2, window_bounds = array<i64: 32, 128>}, {transform_indices = @transform_3, window_bounds = array<i64: 6, 16, 128>}, {transform_indices = @transform_4, window_bounds = array<i64: 16, 128>}]} {
    %c0 = arith.constant 0 : index
    %c0_0 = arith.constant 0 : index
    %0 = vector.load %arg1[%c0, %c0_0] : memref<16x32xf32, #tpu.memory_space<vmem>>, vector<16x32xf32>
    %c0_1 = arith.constant 0 : index
    %c0_2 = arith.constant 0 : index
    %c0_3 = arith.constant 0 : index
    %1 = vector.load %arg2[%c0_1, %c0_2, %c0_3] : memref<6x32x128xf32, #tpu.memory_space<vmem>>, vector<1x32x128xf32>
    %2 = vector.shape_cast %1 : vector<1x32x128xf32> to vector<32x128xf32>
    %cst = arith.constant dense<0.000000e+00> : vector<16x128xf32>
    %3 = tpu.matmul %0, %2, %cst {dimension_numbers = #tpu.dot_dimension_numbers<[1], [0], [0], [1], [0, 0, 1, 1], [], []>} : vector<16x32xf32>, vector<32x128xf32>, vector<16x128xf32> -> vector<16x128xf32>
    %c0_4 = arith.constant 0 : index
    %c0_5 = arith.constant 0 : index
    %c0_6 = arith.constant 0 : index
    %4 = vector.load %arg4[%c0_4, %c0_5, %c0_6] : memref<6x16x128xf32, #tpu.memory_space<vmem>>, vector<1x16x128xf32>
    %5 = vector.shape_cast %4 : vector<1x16x128xf32> to vector<16x128xf32>
    %6 = vector.shape_cast %3 : vector<16x128xf32> to vector<1x16x128xf32>
    tpu.vector_store %arg4[%c0_4, %c0_5, %c0_6], %6 {strides = array<i32>} : memref<6x16x128xf32, #tpu.memory_space<vmem>>, vector<1x16x128xf32>,
    %c1 = arith.constant 1 : index
    %c0_7 = arith.constant 0 : index
    %c0_8 = arith.constant 0 : index
    %7 = vector.load %arg2[%c1, %c0_7, %c0_8] : memref<6x32x128xf32, #tpu.memory_space<vmem>>, vector<1x32x128xf32>
    %8 = vector.shape_cast %7 : vector<1x32x128xf32> to vector<32x128xf32>
    %cst_9 = arith.constant dense<0.000000e+00> : vector<16x128xf32>
    %9 = tpu.matmul %0, %8, %cst_9 {dimension_numbers = #tpu.dot_dimension_numbers<[1], [0], [0], [1], [0, 0, 1, 1], [], []>} : vector<16x32xf32>, vector<32x128xf32>, vector<16x128xf32> -> vector<16x128xf32>
    %c1_10 = arith.constant 1 : index
    %c0_11 = arith.constant 0 : index
    %c0_12 = arith.constant 0 : index
    %10 = vector.load %arg4[%c1_10, %c0_11, %c0_12] : memref<6x16x128xf32, #tpu.memory_space<vmem>>, vector<1x16x128xf32>
    %11 = vector.shape_cast %10 : vector<1x16x128xf32> to vector<16x128xf32>
    %12 = vector.shape_cast %9 : vector<16x128xf32> to vector<1x16x128xf32>
    tpu.vector_store %arg4[%c1_10, %c0_11, %c0_12], %12 {strides = array<i32>} : memref<6x16x128xf32, #tpu.memory_space<vmem>>, vector<1x16x128xf32>,
    %c2 = arith.constant 2 : index
    %c0_13 = arith.constant 0 : index
    %c0_14 = arith.constant 0 : index
    %13 = vector.load %arg2[%c2, %c0_13, %c0_14] : memref<6x32x128xf32, #tpu.memory_space<vmem>>, vector<1x32x128xf32>
    %14 = vector.shape_cast %13 : vector<1x32x128xf32> to vector<32x128xf32>
    %cst_15 = arith.constant dense<0.000000e+00> : vector<16x128xf32>
    %15 = tpu.matmul %0, %14, %cst_15 {dimension_numbers = #tpu.dot_dimension_numbers<[1], [0], [0], [1], [0, 0, 1, 1], [], []>} : vector<16x32xf32>, vector<32x128xf32>, vector<16x128xf32> -> vector<16x128xf32>
    %c2_16 = arith.constant 2 : index
    %c0_17 = arith.constant 0 : index
    %c0_18 = arith.constant 0 : index
    %16 = vector.load %arg4[%c2_16, %c0_17, %c0_18] : memref<6x16x128xf32, #tpu.memory_space<vmem>>, vector<1x16x128xf32>
    %17 = vector.shape_cast %16 : vector<1x16x128xf32> to vector<16x128xf32>
    %18 = vector.shape_cast %15 : vector<16x128xf32> to vector<1x16x128xf32>
    tpu.vector_store %arg4[%c2_16, %c0_17, %c0_18], %18 {strides = array<i32>} : memref<6x16x128xf32, #tpu.memory_space<vmem>>, vector<1x16x128xf32>,
    %c3 = arith.constant 3 : index
    %c0_19 = arith.constant 0 : index
    %c0_20 = arith.constant 0 : index
    %19 = vector.load %arg2[%c3, %c0_19, %c0_20] : memref<6x32x128xf32, #tpu.memory_space<vmem>>, vector<1x32x128xf32>
    %20 = vector.shape_cast %19 : vector<1x32x128xf32> to vector<32x128xf32>
    %cst_21 = arith.constant dense<0.000000e+00> : vector<16x128xf32>
    %21 = tpu.matmul %0, %20, %cst_21 {dimension_numbers = #tpu.dot_dimension_numbers<[1], [0], [0], [1], [0, 0, 1, 1], [], []>} : vector<16x32xf32>, vector<32x128xf32>, vector<16x128xf32> -> vector<16x128xf32>
    %c3_22 = arith.constant 3 : index
    %c0_23 = arith.constant 0 : index
    %c0_24 = arith.constant 0 : index
    %22 = vector.load %arg4[%c3_22, %c0_23, %c0_24] : memref<6x16x128xf32, #tpu.memory_space<vmem>>, vector<1x16x128xf32>
    %23 = vector.shape_cast %22 : vector<1x16x128xf32> to vector<16x128xf32>
    %24 = vector.shape_cast %21 : vector<16x128xf32> to vector<1x16x128xf32>
    tpu.vector_store %arg4[%c3_22, %c0_23, %c0_24], %24 {strides = array<i32>} : memref<6x16x128xf32, #tpu.memory_space<vmem>>, vector<1x16x128xf32>,
    %c4 = arith.constant 4 : index
    %c0_25 = arith.constant 0 : index
    %c0_26 = arith.constant 0 : index
    %25 = vector.load %arg2[%c4, %c0_25, %c0_26] : memref<6x32x128xf32, #tpu.memory_space<vmem>>, vector<1x32x128xf32>
    %26 = vector.shape_cast %25 : vector<1x32x128xf32> to vector<32x128xf32>
    %cst_27 = arith.constant dense<0.000000e+00> : vector<16x128xf32>
    %27 = tpu.matmul %0, %26, %cst_27 {dimension_numbers = #tpu.dot_dimension_numbers<[1], [0], [0], [1], [0, 0, 1, 1], [], []>} : vector<16x32xf32>, vector<32x128xf32>, vector<16x128xf32> -> vector<16x128xf32>
    %c4_28 = arith.constant 4 : index
    %c0_29 = arith.constant 0 : index
    %c0_30 = arith.constant 0 : index
    %28 = vector.load %arg4[%c4_28, %c0_29, %c0_30] : memref<6x16x128xf32, #tpu.memory_space<vmem>>, vector<1x16x128xf32>
    %29 = vector.shape_cast %28 : vector<1x16x128xf32> to vector<16x128xf32>
    %30 = vector.shape_cast %27 : vector<16x128xf32> to vector<1x16x128xf32>
    tpu.vector_store %arg4[%c4_28, %c0_29, %c0_30], %30 {strides = array<i32>} : memref<6x16x128xf32, #tpu.memory_space<vmem>>, vector<1x16x128xf32>,
    %c5 = arith.constant 5 : index
    %c0_31 = arith.constant 0 : index
    %c0_32 = arith.constant 0 : index
    %31 = vector.load %arg2[%c5, %c0_31, %c0_32] : memref<6x32x128xf32, #tpu.memory_space<vmem>>, vector<1x32x128xf32>
    %32 = vector.shape_cast %31 : vector<1x32x128xf32> to vector<32x128xf32>
    %cst_33 = arith.constant dense<0.000000e+00> : vector<16x128xf32>
    %33 = tpu.matmul %0, %32, %cst_33 {dimension_numbers = #tpu.dot_dimension_numbers<[1], [0], [0], [1], [0, 0, 1, 1], [], []>} : vector<16x32xf32>, vector<32x128xf32>, vector<16x128xf32> -> vector<16x128xf32>
    %c5_34 = arith.constant 5 : index
    %c0_35 = arith.constant 0 : index
    %c0_36 = arith.constant 0 : index
    %34 = vector.load %arg4[%c5_34, %c0_35, %c0_36] : memref<6x16x128xf32, #tpu.memory_space<vmem>>, vector<1x16x128xf32>
    %35 = vector.shape_cast %34 : vector<1x16x128xf32> to vector<16x128xf32>
    %36 = vector.shape_cast %33 : vector<16x128xf32> to vector<1x16x128xf32>
    tpu.vector_store %arg4[%c5_34, %c0_35, %c0_36], %36 {strides = array<i32>} : memref<6x16x128xf32, #tpu.memory_space<vmem>>, vector<1x16x128xf32>,
    %c0_37 = arith.constant 0 : index
    %c0_38 = arith.constant 0 : index
    %37 = vector.load %arg3[%c0_37, %c0_38] : memref<32x128xf32, #tpu.memory_space<vmem>>, vector<32x128xf32>
    %cst_39 = arith.constant dense<0.000000e+00> : vector<16x128xf32>
    %38 = tpu.matmul %0, %37, %cst_39 {dimension_numbers = #tpu.dot_dimension_numbers<[1], [0], [0], [1], [0, 0, 1, 1], [], []>} : vector<16x32xf32>, vector<32x128xf32>, vector<16x128xf32> -> vector<16x128xf32>
    %c0_40 = arith.constant 0 : index
    %c0_41 = arith.constant 0 : index
    %39 = vector.load %arg5[%c0_40, %c0_41] : memref<16x128xf32, #tpu.memory_space<vmem>>, vector<16x128xf32>
    tpu.vector_store %arg5[%c0_40, %c0_41], %38 {strides = array<i32>} : memref<16x128xf32, #tpu.memory_space<vmem>>, vector<16x128xf32>,
    return
  }
  func.func @transform_0(%arg0: i32) -> (i32, i32) {
    %c0_i32 = arith.constant 0 : i32
    %c0_i32_0 = arith.constant 0 : i32
    return %arg0, %c0_i32 : i32, i32
  }
  func.func @transform_1(%arg0: i32) -> (i32, i32, i32) {
    %c0_i32 = arith.constant 0 : i32
    %c0_i32_0 = arith.constant 0 : i32
    %c0_i32_1 = arith.constant 0 : i32
    %c0_i32_2 = arith.constant 0 : i32
    return %c0_i32, %c0_i32_0, %c0_i32_1 : i32, i32, i32
  }
  func.func @transform_2(%arg0: i32) -> (i32, i32) {
    %c0_i32 = arith.constant 0 : i32
    %c0_i32_0 = arith.constant 0 : i32
    %c0_i32_1 = arith.constant 0 : i32
    return %c0_i32, %c0_i32_0 : i32, i32
  }
  func.func @transform_3(%arg0: i32) -> (i32, i32, i32) {
    %c0_i32 = arith.constant 0 : i32
    %c0_i32_0 = arith.constant 0 : i32
    %c0_i32_1 = arith.constant 0 : i32
    return %c0_i32, %arg0, %c0_i32_0 : i32, i32, i32
  }
  func.func @transform_4(%arg0: i32) -> (i32, i32) {
    %c0_i32 = arith.constant 0 : i32
    %c0_i32_0 = arith.constant 0 : i32
    return %arg0, %c0_i32 : i32, i32
  }
}

module attributes {stable_mosaic.version = 11 : i64} {
  func.func @_rgcn_contract_kernel(%arg0: i32, %arg1: i32, %arg2: memref<16x96xf32, #tpu.memory_space<vmem>>, %arg3: memref<96x128xf32, #tpu.memory_space<vmem>>, %arg4: memref<16x128xf32, #tpu.memory_space<vmem>>, %arg5: memref<1x128xf32, #tpu.memory_space<vmem>>, %arg6: memref<16x128xf32, #tpu.memory_space<vmem>>, %arg7: memref<16x128xf32, #tpu.memory_space<vmem>>) attributes {dimension_semantics = [#tpu.dimension_semantics<parallel>, #tpu.dimension_semantics<arbitrary>], iteration_bounds = array<i64: 1, 1>, scalar_prefetch = 0 : i64, scratch_operands = 1 : i64, tpu.core_type = #tpu.core_type<tc>, window_params = [{transform_indices = @transform_0, window_bounds = array<i64: 16, 96>}, {transform_indices = @transform_1, window_bounds = array<i64: 96, 128>}, {transform_indices = @transform_2, window_bounds = array<i64: 16, 128>}, {pipeline_mode = #tpu.pipeline_mode<synchronous>, transform_indices = @transform_3, window_bounds = array<i64: 1, 128>}, {transform_indices = @transform_4, window_bounds = array<i64: 16, 128>}]} {
    %c0_i32 = arith.constant 0 : i32
    %0 = arith.cmpi eq, %arg1, %c0_i32 : i32
    %1 = arith.extui %0 : i1 to i32
    %c0_i32_0 = arith.constant 0 : i32
    %2 = arith.cmpi ne, %1, %c0_i32_0 : i32
    scf.if %2 {
      %c0_10 = arith.constant 0 : index
      %c0_11 = arith.constant 0 : index
      %12 = vector.load %arg4[%c0_10, %c0_11] : memref<16x128xf32, #tpu.memory_space<vmem>>, vector<16x128xf32>
      %c0_12 = arith.constant 0 : index
      %c0_13 = arith.constant 0 : index
      %13 = vector.load %arg5[%c0_12, %c0_13] : memref<1x128xf32, #tpu.memory_space<vmem>>, vector<1x128xf32>
      %14 = vector.broadcast %13 : vector<1x128xf32> to vector<16x128xf32>
      %15 = arith.addf %12, %14 : vector<16x128xf32>
      %c0_14 = arith.constant 0 : index
      %c0_15 = arith.constant 0 : index
      %16 = vector.load %arg7[%c0_14, %c0_15] : memref<16x128xf32, #tpu.memory_space<vmem>>, vector<16x128xf32>
      tpu.vector_store %arg7[%c0_14, %c0_15], %15 {strides = array<i32>} : memref<16x128xf32, #tpu.memory_space<vmem>>, vector<16x128xf32>,
    } else {
    }
    %c0 = arith.constant 0 : index
    %c0_1 = arith.constant 0 : index
    %3 = vector.load %arg7[%c0, %c0_1] : memref<16x128xf32, #tpu.memory_space<vmem>>, vector<16x128xf32>
    %c0_2 = arith.constant 0 : index
    %c0_3 = arith.constant 0 : index
    %4 = vector.load %arg2[%c0_2, %c0_3] : memref<16x96xf32, #tpu.memory_space<vmem>>, vector<16x96xf32>
    %c0_4 = arith.constant 0 : index
    %c0_5 = arith.constant 0 : index
    %5 = vector.load %arg3[%c0_4, %c0_5] : memref<96x128xf32, #tpu.memory_space<vmem>>, vector<96x128xf32>
    %cst = arith.constant dense<0.000000e+00> : vector<16x128xf32>
    %6 = tpu.matmul %4, %5, %cst {dimension_numbers = #tpu.dot_dimension_numbers<[1], [0], [0], [1], [0, 0, 1, 1], [], []>} : vector<16x96xf32>, vector<96x128xf32>, vector<16x128xf32> -> vector<16x128xf32>
    %7 = arith.addf %3, %6 : vector<16x128xf32>
    %c0_6 = arith.constant 0 : index
    %c0_7 = arith.constant 0 : index
    %8 = vector.load %arg7[%c0_6, %c0_7] : memref<16x128xf32, #tpu.memory_space<vmem>>, vector<16x128xf32>
    tpu.vector_store %arg7[%c0_6, %c0_7], %7 {strides = array<i32>} : memref<16x128xf32, #tpu.memory_space<vmem>>, vector<16x128xf32>,
    %c0_i32_8 = arith.constant 0 : i32
    %9 = arith.cmpi eq, %arg1, %c0_i32_8 : i32
    %10 = arith.extui %9 : i1 to i32
    %c0_i32_9 = arith.constant 0 : i32
    %11 = arith.cmpi ne, %10, %c0_i32_9 : i32
    scf.if %11 {
      %c0_10 = arith.constant 0 : index
      %c0_11 = arith.constant 0 : index
      %12 = vector.load %arg7[%c0_10, %c0_11] : memref<16x128xf32, #tpu.memory_space<vmem>>, vector<16x128xf32>
      %c0_12 = arith.constant 0 : index
      %c0_13 = arith.constant 0 : index
      %13 = vector.load %arg6[%c0_12, %c0_13] : memref<16x128xf32, #tpu.memory_space<vmem>>, vector<16x128xf32>
      tpu.vector_store %arg6[%c0_12, %c0_13], %12 {strides = array<i32>} : memref<16x128xf32, #tpu.memory_space<vmem>>, vector<16x128xf32>,
    } else {
    }
    return
  }
  func.func @transform_0(%arg0: i32, %arg1: i32) -> (i32, i32) {
    %c0_i32 = arith.constant 0 : i32
    return %arg0, %arg1 : i32, i32
  }
  func.func @transform_1(%arg0: i32, %arg1: i32) -> (i32, i32) {
    %c0_i32 = arith.constant 0 : i32
    %c0_i32_0 = arith.constant 0 : i32
    return %arg1, %c0_i32 : i32, i32
  }
  func.func @transform_2(%arg0: i32, %arg1: i32) -> (i32, i32) {
    %c0_i32 = arith.constant 0 : i32
    %c0_i32_0 = arith.constant 0 : i32
    return %arg0, %c0_i32 : i32, i32
  }
  func.func @transform_3(%arg0: i32, %arg1: i32) -> (i32, i32) {
    %c0_i32 = arith.constant 0 : i32
    %c0_i32_0 = arith.constant 0 : i32
    %c0_i32_1 = arith.constant 0 : i32
    return %c0_i32, %c0_i32_0 : i32, i32
  }
  func.func @transform_4(%arg0: i32, %arg1: i32) -> (i32, i32) {
    %c0_i32 = arith.constant 0 : i32
    %c0_i32_0 = arith.constant 0 : i32
    return %arg0, %c0_i32 : i32, i32
  }
}

</mosaic_0001>

<bundles_post_ra>
// kernel: rgcn_conv_pallas.3
= control target key start
LH: loop header
LB: loop body
LE: loop exit
PB: predicated region body
PF: predicated region fallthrough
CT: control target
= control target key end

     0   :  { %vm51_vm0 = vcmask 785408   ;;  %s313_s0 = inlined_call_operand.vmem [shape: f32[16,96], index: 0, kind: input, shape index: {}]   ;;  %s314_s1 = inlined_call_operand.vmem [shape: f32[96,128], index: 1, kind: input, shape index: {}]   ;;  %s315_s2 = inlined_call_operand.vmem [shape: f32[16,128], index: 2, kind: input, shape index: {}]   ;;  %s316_s3 = inlined_call_operand.vmem [shape: f32[1,128], index: 3, kind: input, shape index: {}]   ;;  %s317_s4 = inlined_call_operand.hbm [shape: f32[16,128], index: 4, kind: output, shape index: {}]  }
   0x1   :  { %v50_v0 = vld [vmem:[%s314_s1 + $0x58] sm:$0xff]  ;;  %v49_v1 = vld [vmem:[%s314_s1 + $0x50] sm:$0xff]  ;;  %v48_v2 = vld [vmem:[%s314_s1 + $0x48] sm:$0xff] }
   0x2   :  { %177 = vmatprep.subr.mxu0 %v50_v0  ;;  %v47_v3 = vld [vmem:[%s314_s1 + $0x40] sm:$0xff] }
   0x3   :  { %178 = vmatpush3.msra.mxu0 %v50_v0  ;;  %v37_v4 = vld [vmem:[%s313_s0] sm:$0xff] }
   0x4   :  { %179 = vmatprep.subr.mxu0 %v49_v1  ;;  %201 = vmatprep.mubr.msk.f32.mxu0 %vm51_vm0, %v37_v4 }
   0x5   :  { %180 = vmatpush3.msra.mxu0 %v49_v1 }
   0x6   :  { %181 = vmatprep.subr.mxu0 %v48_v2 }
   0x7   :  { %9 = vsyncpa [#allocation4], 0  ;;  %182 = vmatpush3.msra.mxu0 %v48_v2  ;;  %v46_v5 = vld [vmem:[%s314_s1 + $0x38] sm:$0xff]  ;;  %v45_v6 = vld [vmem:[%s314_s1 + $0x30] sm:$0xff]  ;;  %s229_s22 = smov [#allocation3]  }
   0x8   :  { %183 = vmatprep.subr.mxu0 %v47_v3  ;;  %v44_v7 = vld [vmem:[%s314_s1 + $0x28] sm:$0xff]  ;;  %v43_v8 = vld [vmem:[%s314_s1 + $0x20] sm:$0xff]  ;;  %v42_v9 = vld [vmem:[%s314_s1 + $0x18] sm:$0xff] }
   0x9   :  { %184 = vmatpush3.msra.mxu0 %v47_v3  ;;  %v41_v10 = vld [vmem:[%s314_s1 + $0x10] sm:$0xff]  ;;  %v40_v11 = vld [vmem:[%s314_s1 + $0x8] sm:$0xff]  ;;  %v39_v12 = vld [vmem:[%s314_s1] sm:$0xff] }
   0xa   :  { %185 = vmatprep.subr.mxu0 %v46_v5  ;;  %v38_v13 = vld [vmem:[%s313_s0 + $0x8] sm:$0xff]  ;;  %v160_v15 = vld [vmem:[%s316_s3] ss:$0 sm:$0xff]  ;;  %s149_s0 = sshll.u32 %s229_s22, 4  ;;  %s150_s0 = int_to_ptr.vmem [resolvable:$true] %s149_s0 }
   0xb   :  { %186 = vmatpush3.msra.mxu0 %v46_v5  ;;  %v23_v14 = vld [vmem:[%s315_s2 + $0x8] sm:$0xff]  ;;  %v22_v16 = vld [vmem:[%s315_s2] sm:$0xff]  ;;  %s207_s23 = scalar_lea.vmem %s150_s0, 256  ;;  %p212_p1 = scmp.lt.s32.totalorder %s150_s0, %s150_s0 }
   0xc   :  { %187 = vmatprep.subr.mxu0 %v45_v6  ;;  %v32_v17 = vadd.f32 %v160_v15, %v23_v14  ;;  %v31_v18 = vadd.f32 %v160_v15, %v22_v16  ;;  %p208_p0 = scmp.ne.s32.totalorder %s150_s0, %s207_s23  ;;  %p213_p2 = scmp.lt.s32.totalorder %s207_s23, %s207_s23 }
   0xd   :  { %188 = vmatpush3.msra.mxu0 %v45_v6 }
   0xe   :  { %189 = vmatprep.subr.mxu0 %v44_v7  ;;  %p214_p3 = por %p213_p2, %p212_p1 }
   0xf   :  { %190 = vmatpush3.msra.mxu0 %v44_v7 }
  0x10   :  { %191 = vmatprep.subr.mxu0 %v43_v8  ;;  %p215_p4 = pnand %p214_p3, %p208_p0 }
  0x11   :  { %192 = vmatpush3.msra.mxu0 %v43_v8 }
  0x12   :  { %193 = vmatprep.subr.mxu0 %v42_v9 }
  0x13   :  { %194 = vmatpush3.msra.mxu0 %v42_v9 }
  0x14   :  { %195 = vmatprep.subr.mxu0 %v41_v10 }
  0x15   :  { %196 = vmatpush3.msra.mxu0 %v41_v10 }
  0x16   :  { %197 = vmatprep.subr.mxu0 %v40_v11 }
  0x17   :  { %198 = vmatpush3.msra.mxu0 %v40_v11 }
  0x18   :  { %199 = vmatprep.subr.mxu0 %v39_v12 }
  0x19   :  { %200 = vmatpush3.msra.mxu0 %v39_v12 }
  0x1a   :  { %202 = vmatmul.mubr.msk.f32.vlgmr.msra.gmra.mxu0 %vm51_vm0, %v38_v13 }
  0xda   :  { %v203_v19 = vpop.f32.mrf.mxu0 }
  0xdb   :  { %v134_v20 = vadd.f32 %v203_v19, %v32_v17 }
  0xdc   :  { %v124_v21 = vpop.f32.mrf.mxu0 }
  0xdd   :  { %143 = vst [vmem:[#allocation3 + $0x8] sm:$0xff] %v134_v20  ;;  %v133_v22 = vadd.f32 %v124_v21, %v31_v18 }
  0xdf   :  { %142 = vst [vmem:[#allocation3] sm:$0xff] %v133_v22 }
  0xe0   :  { %218 = shalt.err (!%p215_p4)
}
  0xe1   :  { %s230_s3 = smov 128   ;;  %s231_s2 = smov 8  }
  0xe2   :  { %155 = dma.vmem_to_hbm [thread:$0]  %s150_s0, 256, %s317_s4, [#allocation4], %s230_s3, %s230_s3, %s231_s2  }
  0xe3   :  { %227 = dma.done.wait [#allocation4], 256  }
  0xe4   :  { %228 = vsyncadd [#allocation4], 4294967040 }
  0xe5   :  { %159 = vsyncpa [#allocation4], 1 }

// kernel: rgcn_conv_pallas.2
= control target key start
LH: loop header
LB: loop body
LE: loop exit
PB: predicated region body
PF: predicated region fallthrough
CT: control target
= control target key end

     0   :  { %vm22_vm0 = vcmask 261120   ;;  %s962_s1 = inlined_call_operand.vmem [shape: f32[6,32,128], index: 1, kind: input, shape index: {}]   ;;  %s963_s0 = inlined_call_operand.vmem [shape: f32[16,32], index: 0, kind: input, shape index: {}]   ;;  %s964_s2 = inlined_call_operand.vmem [shape: f32[32,128], index: 2, kind: input, shape index: {}]   ;;  %s965_s3 = inlined_call_operand.vmem [shape: f32[6,16,128], index: 3, kind: output, shape index: {0}]   ;;  %s966_s4 = inlined_call_operand.vmem [shape: f32[16,128], index: 4, kind: output, shape index: {1}]  }
   0x1   :  { %v21_v0 = vld [vmem:[%s962_s1 + $0x18] sm:$0xff]  ;;  %v20_v1 = vld [vmem:[%s962_s1 + $0x10] sm:$0xff]  ;;  %v810_v3 = vld [vmem:[%s963_s0] sm:$0xff] }
   0x2   :  { %696 = vmatprep.subr.mxu0 %v21_v0  ;;  %v615_v2 = vld [vmem:[%s962_s1 + $0x38] sm:$0xff]  ;;  %v19_v4 = vld [vmem:[%s962_s1 + $0x8] sm:$0xff]  ;;  %v614_v5 = vld [vmem:[%s962_s1 + $0x30] sm:$0xff]  ;;  %704 = vmatprep.mubr.msk.f32.mxu0 %vm22_vm0, %v810_v3 }
   0x3   :  { %697 = vmatpush3.msra.mxu0 %v21_v0  ;;  %707 = vmatprep.subr.mxu1 %v615_v2  ;;  %v18_v6 = vld [vmem:[%s962_s1] sm:$0xff]  ;;  %v613_v7 = vld [vmem:[%s962_s1 + $0x28] sm:$0xff]  ;;  %v623_v9 = vld [vmem:[%s962_s1 + $0x58] sm:$0xff] }
   0x4   :  { %698 = vmatprep.subr.mxu0 %v20_v1  ;;  %708 = vmatpush3.msra.mxu1 %v615_v2  ;;  %v829_v8 = vld [vmem:[%s963_s0 + $0x8] sm:$0xff]  ;;  %v612_v10 = vld [vmem:[%s962_s1 + $0x20] sm:$0xff]  ;;  %v622_v11 = vld [vmem:[%s962_s1 + $0x50] sm:$0xff] }
   0x5   :  { %699 = vmatpush3.msra.mxu0 %v20_v1  ;;  %709 = vmatprep.subr.mxu1 %v614_v5  ;;  %v621_v12 = vld [vmem:[%s962_s1 + $0x48] sm:$0xff]  ;;  %v631_v13 = vld [vmem:[%s962_s1 + $0x78] sm:$0xff]  ;;  %v620_v14 = vld [vmem:[%s962_s1 + $0x40] sm:$0xff] }
   0x6   :  { %700 = vmatprep.subr.mxu0 %v19_v4  ;;  %710 = vmatpush3.msra.mxu1 %v614_v5  ;;  %v630_v15 = vld [vmem:[%s962_s1 + $0x70] sm:$0xff]  ;;  %v639_v16 = vld [vmem:[%s962_s1 + $0x98] sm:$0xff]  ;;  %v629_v17 = vld [vmem:[%s962_s1 + $0x68] sm:$0xff] }
   0x7   :  { %701 = vmatpush3.msra.mxu0 %v19_v4  ;;  %711 = vmatprep.subr.mxu1 %v613_v7  ;;  %v638_v18 = vld [vmem:[%s962_s1 + $0x90] sm:$0xff]  ;;  %v628_v19 = vld [vmem:[%s962_s1 + $0x60] sm:$0xff]  ;;  %v637_v20 = vld [vmem:[%s962_s1 + $0x88] sm:$0xff] }
   0x8   :  { %702 = vmatprep.subr.mxu0 %v18_v6  ;;  %712 = vmatpush3.msra.mxu1 %v613_v7  ;;  %v636_v21 = vld [vmem:[%s962_s1 + $0x80] sm:$0xff]  ;;  %v647_v22 = vld [vmem:[%s962_s1 + $0xb8] sm:$0xff]  ;;  %v646_v23 = vld [vmem:[%s962_s1 + $0xb0] sm:$0xff] }
   0x9   :  { %703 = vmatpush3.msra.mxu0 %v18_v6  ;;  %713 = vmatprep.subr.mxu1 %v612_v10  ;;  %v524_v24 = vld [vmem:[%s964_s2 + $0x18] sm:$0xff]  ;;  %v645_v25 = vld [vmem:[%s962_s1 + $0xa8] sm:$0xff]  ;;  %v523_v26 = vld [vmem:[%s964_s2 + $0x10] sm:$0xff] }
   0xa   :  { %705 = vmatmul.mubr.msk.f32.vlgmr.msra.gmra.mxu0 %vm22_vm0, %v829_v8  ;;  %718 = vmatprep.subr.mxu0 %v623_v9  ;;  %v644_v27 = vld [vmem:[%s962_s1 + $0xa0] sm:$0xff]  ;;  %v522_v28 = vld [vmem:[%s964_s2 + $0x8] sm:$0xff] }
   0xb   :  { %719 = vmatpush3.msra.mxu0 %v623_v9  ;;  %714 = vmatpush3.msra.mxu1 %v612_v10  ;;  %v521_v29 = vld [vmem:[%s964_s2] sm:$0xff] }
   0xc   :  { %720 = vmatprep.subr.mxu0 %v622_v11  ;;  %715 = vmatprep.mubr.msk.f32.mxu1 %vm22_vm0, %v810_v3 }
   0xd   :  { %721 = vmatpush3.msra.mxu0 %v622_v11  ;;  %729 = vmatprep.subr.mxu1 %v631_v13 }
   0xe   :  { %722 = vmatprep.subr.mxu0 %v621_v12  ;;  %716 = vmatmul.mubr.msk.f32.vlgmr.msra.gmra.mxu1 %vm22_vm0, %v829_v8 }
   0xf   :  { %723 = vmatpush3.msra.mxu0 %v621_v12  ;;  %726 = vmatprep.mubr.msk.f32.mxu0 %vm22_vm0, %v810_v3 }
  0x10   :  { %724 = vmatprep.subr.mxu0 %v620_v14  ;;  %730 = vmatpush3.msra.mxu1 %v631_v13 }
  0x11   :  { %725 = vmatpush3.msra.mxu0 %v620_v14  ;;  %731 = vmatprep.subr.mxu1 %v630_v15 }
  0x12   :  { %727 = vmatmul.mubr.msk.f32.vlgmr.msra.gmra.mxu0 %vm22_vm0, %v829_v8  ;;  %740 = vmatprep.subr.mxu0 %v639_v16 }
  0x13   :  { %732 = vmatpush3.msra.mxu1 %v630_v15  ;;  %741 = vmatpush3.msra.mxu0 %v639_v16 }
  0x14   :  { %733 = vmatprep.subr.mxu1 %v629_v17  ;;  %742 = vmatprep.subr.mxu0 %v638_v18 }
  0x15   :  { %734 = vmatpush3.msra.mxu1 %v629_v17  ;;  %743 = vmatpush3.msra.mxu0 %v638_v18 }
  0x16   :  { %735 = vmatprep.subr.mxu1 %v628_v19  ;;  %744 = vmatprep.subr.mxu0 %v637_v20 }
  0x17   :  { %736 = vmatpush3.msra.mxu1 %v628_v19  ;;  %745 = vmatpush3.msra.mxu0 %v637_v20 }
  0x18   :  { %737 = vmatprep.mubr.msk.f32.mxu1 %vm22_vm0, %v810_v3  ;;  %746 = vmatprep.subr.mxu0 %v636_v21 }
  0x19   :  { %751 = vmatprep.subr.mxu1 %v647_v22  ;;  %738 = vmatmul.mubr.msk.f32.vlgmr.msra.gmra.mxu1 %vm22_vm0, %v829_v8 }
  0x1a   :  { %747 = vmatpush3.msra.mxu0 %v636_v21  ;;  %748 = vmatprep.mubr.msk.f32.mxu0 %vm22_vm0, %v810_v3 }
  0x1b   :  { %752 = vmatpush3.msra.mxu1 %v647_v22  ;;  %749 = vmatmul.mubr.msk.f32.vlgmr.msra.gmra.mxu0 %vm22_vm0, %v829_v8 }
  0x1c   :  { %753 = vmatprep.subr.mxu1 %v646_v23  ;;  %762 = vmatprep.subr.mxu0 %v524_v24 }
  0x1d   :  { %754 = vmatpush3.msra.mxu1 %v646_v23  ;;  %763 = vmatpush3.msra.mxu0 %v524_v24 }
  0x1e   :  { %755 = vmatprep.subr.mxu1 %v645_v25  ;;  %764 = vmatprep.subr.mxu0 %v523_v26 }
  0x1f   :  { %756 = vmatpush3.msra.mxu1 %v645_v25  ;;  %765 = vmatpush3.msra.mxu0 %v523_v26 }
  0x20   :  { %757 = vmatprep.subr.mxu1 %v644_v27  ;;  %766 = vmatprep.subr.mxu0 %v522_v28 }
  0x21   :  { %758 = vmatpush3.msra.mxu1 %v644_v27  ;;  %759 = vmatprep.mubr.msk.f32.mxu1 %vm22_vm0, %v810_v3 }
  0x22   :  { %767 = vmatpush3.msra.mxu0 %v522_v28  ;;  %760 = vmatmul.mubr.msk.f32.vlgmr.msra.gmra.mxu1 %vm22_vm0, %v829_v8 }
  0x23   :  { %768 = vmatprep.subr.mxu0 %v521_v29  ;;  %770 = vmatprep.mubr.msk.f32.mxu0 %vm22_vm0, %v810_v3 }
  0x24   :  { %769 = vmatpush3.msra.mxu0 %v521_v29 }
  0x25   :  { %771 = vmatmul.mubr.msk.f32.vlgmr.msra.gmra.mxu0 %vm22_vm0, %v829_v8 }
  0xca   :  { %v706_v30 = vpop.f32.mrf.mxu0 }
  0xcb   :  { %105 = vst [vmem:[%s965_s3 + $0x8] sm:$0xff] %v706_v30 }
  0xcc   :  { %v95_v31 = vpop.f32.mrf.mxu0 }
  0xcd   :  { %104 = vst [vmem:[%s965_s3] sm:$0xff] %v95_v31 }
  0xce   :  { %v717_v32 = vpop.f32.mrf.mxu1 }
  0xcf   :  { %619 = vst [vmem:[%s965_s3 + $0x18] sm:$0xff] %v717_v32 }
  0xd0   :  { %v177_v33 = vpop.f32.mrf.mxu1 }
  0xd1   :  { %618 = vst [vmem:[%s965_s3 + $0x10] sm:$0xff] %v177_v33 }
  0xd2   :  { %v728_v34 = vpop.f32.mrf.mxu0 }
  0xd3   :  { %627 = vst [vmem:[%s965_s3 + $0x28] sm:$0xff] %v728_v34 }
  0xd4   :  { %v260_v35 = vpop.f32.mrf.mxu0 }
  0xd5   :  { %626 = vst [vmem:[%s965_s3 + $0x20] sm:$0xff] %v260_v35 }
  0xd9   :  { %v739_v36 = vpop.f32.mrf.mxu1 }
  0xda   :  { %635 = vst [vmem:[%s965_s3 + $0x38] sm:$0xff] %v739_v36 }
  0xdb   :  { %v750_v37 = vpop.f32.mrf.mxu0  ;;  %v343_v38 = vpop.f32.mrf.mxu1 }
  0xdc   :  { %643 = vst [vmem:[%s965_s3 + $0x48] sm:$0xff] %v750_v37  ;;  %634 = vst [vmem:[%s965_s3 + $0x30] sm:$0xff] %v343_v38 }
  0xdd   :  { %v426_v39 = vpop.f32.mrf.mxu0 }
  0xde   :  { %642 = vst [vmem:[%s965_s3 + $0x40] sm:$0xff] %v426_v39 }
  0xe2   :  { %v761_v40 = vpop.f32.mrf.mxu1 }
  0xe3   :  { %651 = vst [vmem:[%s965_s3 + $0x58] sm:$0xff] %v761_v40 }
  0xe4   :  { %v509_v41 = vpop.f32.mrf.mxu1 }
  0xe5   :  { %v772_v42 = vpop.f32.mrf.mxu0  ;;  %650 = vst [vmem:[%s965_s3 + $0x50] sm:$0xff] %v509_v41 }
  0xe6   :  { %601 = vst [vmem:[%s966_s4 + $0x8] sm:$0xff] %v772_v42 }
  0xe7   :  { %v591_v43 = vpop.f32.mrf.mxu0 }
  0xe8   :  { %600 = vst [vmem:[%s966_s4] sm:$0xff] %v591_v43 }

</bundles_post_ra>
